<compile_context>
chip_gen: v7x
topology: tpu7x:2x2x1
jax: 0.10.0
libtpu: 0.0.40
codegen_flags: <defaults>
</compile_context>

<pallas_src>
import math

import jax
import jax.numpy as jnp
from jax.experimental import pallas as pl
from jax.experimental.pallas import tpu as pltpu


def _round_up(v, m):
    return (v + m - 1) // m * m


def _cdiv(a, b):
    return (a + b - 1) // b


# --------------- chip introspection (trace-time, with safe fallbacks) ---------------

def _vmem_capacity_bytes():
    try:
        return int(pltpu.get_tpu_info().vmem_capacity_bytes)
    except Exception:
        return 64 << 20  # conservative fallback: v7x physical VMEM per TensorCore


def _num_tensorcores():
    """Number of TensorCores behind one JAX device (2 on megacore chips)."""
    try:
        d = jax.devices()[0]
        n = getattr(d, "num_cores", None)
        if isinstance(n, int) and n > 0:
            return n
        kind = (getattr(d, "device_kind", "") or "").lower()
        if any(tag in kind for tag in ("v4", "v5p", "v7")):
            return 2
        return 1
    except Exception:
        return 1


def _w_block_spec(tk, tn, n_k_blocks):
    """BlockSpec for the weight stream; 3-deep pipeline when there is a K loop."""
    idx = lambda i, j, k: (k, j)
    if n_k_blocks >= 2:
        try:
            return pl.BlockSpec((tk, tn), idx, pipeline_mode=pl.Buffered(3))
        except TypeError:  # older jax without pipeline_mode: fall back to default 2-buffer
            pass
    return pl.BlockSpec((tk, tn), idx)


# -------------------------------- kernel --------------------------------------------

def fc_block_kernel(x_ref, w_ref, b_ref, o_ref, acc_ref):
    # x_ref: [tm, tk], w_ref: [tk, tn], b_ref: [1, tn] (f32), o_ref: [tm, tn]
    # acc_ref: [tm, tn] f32 scratch, resident across the K (last, arbitrary) axis.
    k = pl.program_id(2)

    @pl.when(k == 0)
    def _init():
        # Fold the bias into the accumulator init: removes one (tm, tn) VPU add
        # from the (serial) finalize tail of every output block.
        acc_ref[...] = jnp.broadcast_to(b_ref[...], acc_ref.shape)

    acc_ref[...] += jnp.dot(
        x_ref[...], w_ref[...], preferred_element_type=jnp.float32
    )

    @pl.when(k == pl.num_programs(2) - 1)
    def _finalize():
        o_ref[...] = jnp.maximum(acc_ref[...], 0.0).astype(o_ref.dtype)


# ------------------------------- module wrapper --------------------------------------

class PallasFcBlock:
    """y = ReLU(x @ W + b) with weights cast/padded ONCE at construction.

    compute_dtype: dtype fed to the MXU (e.g. jnp.bfloat16 on v6e/v7x for ~3-6x
    matmul throughput and half the W HBM bytes); accumulation is always f32.
    """

    def __init__(self, w_t, b, *, compute_dtype=None, out_dtype=None):
        IN, OUT = w_t.shape
        assert b.shape == (OUT,)
        self.in_features = IN
        self.out_features = OUT
        self.compute_dtype = (
            jnp.dtype(compute_dtype) if compute_dtype is not None else jnp.dtype(w_t.dtype)
        )
        self.out_dtype = (
            jnp.dtype(out_dtype) if out_dtype is not None else jnp.dtype(w_t.dtype)
        )

        self._vmem_cap = _vmem_capacity_bytes()
        self._n_cores = _num_tensorcores()
        # Leave headroom for Mosaic's internal scratch (matters on v7x's 64 MiB VMEM).
        self._vmem_cap_usable = max(32 << 20, (self._vmem_cap * 3) // 4)

        in_isz = self.compute_dtype.itemsize
        out_isz = self.out_dtype.itemsize
        self.tm_max, self.tn, self.tk = self._select_tiles(IN, OUT, in_isz, out_isz)

        # --- hoisted weight prep: cast + pad exactly once ---
        INp = _round_up(IN, self.tk)
        OUTp = _round_up(OUT, self.tn)
        wp = w_t.astype(self.compute_dtype)
        if (INp, OUTp) != (IN, OUT):
            wp = jnp.pad(wp, ((0, INp - IN), (0, OUTp - OUT)))
        bp = b.astype(jnp.float32)
        if OUTp != OUT:
            bp = jnp.pad(bp, (0, OUTp - OUT))
        self.w_padded = wp
        self.b_padded = bp.reshape(1, OUTp)
        self.in_padded = INp
        self.out_padded = OUTp

    def _select_tiles(self, IN, OUT, in_isz, out_isz):
        OUTp128 = _round_up(OUT, 128)
        INp128 = _round_up(IN, 128)
        tm_max = 256
        # Big K/N tiles amortize per-grid-step overhead and lengthen each W DMA.
        tn = min(1024, OUTp128)
        if self._n_cores >= 2 and OUTp128 >= 256:
            # Guarantee >=2 blocks along the (parallel) N axis so both
            # TensorCores get work even when the batch fits a single M block.
            tn = min(tn, _round_up(_cdiv(OUTp128, 2), 128))
        tk = min(2048, INp128)

        def budget(tk_, tn_):
            return (
                2 * tm_max * tk_ * in_isz       # x double-buffer
                + 3 * tk_ * tn_ * in_isz        # W, Buffered(3)
                + 2 * tn_ * 4                   # bias double-buffer
                + 2 * tm_max * tn_ * out_isz    # output double-buffer
                + tm_max * tn_ * 4              # f32 accumulator
            )

        # Shrink K first, then N, until the working set fits the per-chip cap.
        while budget(tk, tn) + (8 << 20) > self._vmem_cap_usable and tk > 512:
            tk = max(512, _round_up(tk // 2, 128))
        while budget(tk, tn) + (8 << 20) > self._vmem_cap_usable and tn > 256:
            tn = max(256, _round_up(tn // 2, 128))
        return tm_max, tn, tk

    def __call__(self, x):
        orig_shape = x.shape
        IN = self.in_features
        assert orig_shape[-1] == IN
        x2 = x.reshape(-1, IN)
        B = x2.shape[0]

        in_isz = self.compute_dtype.itemsize
        out_isz = self.out_dtype.itemsize
        # Round batch tile to the packed-sublane multiple of the compute dtype.
        sub = {1: 32, 2: 16}.get(in_isz, 8)
        # Split B into near-equal chunks <= tm_max so padding stays <= one sublane group.
        n_chunks = max(1, _cdiv(B, self.tm_max))
        tm = min(_round_up(_cdiv(B, n_chunks), sub), self.tm_max)
        Bp = _round_up(B, tm)

        INp, OUTp, tn, tk = self.in_padded, self.out_padded, self.tn, self.tk

        xp = x2.astype(self.compute_dtype)
        if (Bp, INp) != (B, IN):
            xp = jnp.pad(xp, ((0, Bp - B), (0, INp - IN)))

        grid = (Bp // tm, OUTp // tn, INp // tk)
        n_m, n_n, n_k = grid

        vmem_budget = (
            2 * tm * tk * in_isz
            + (3 if n_k >= 2 else 2) * tk * tn * in_isz
            + 2 * tn * 4
            + 2 * tm * tn * out_isz
            + tm * tn * 4
        )
        vmem_limit = int(
            min(max(vmem_budget + (8 << 20), 32 << 20), self._vmem_cap_usable)
        )

        cost = pl.CostEstimate(
            flops=2 * Bp * INp * OUTp,
            transcendentals=0,
            bytes_accessed=(
                Bp * INp * in_isz * n_n        # x re-streamed once per N block
                + INp * OUTp * in_isz * n_m    # W re-streamed once per M block
                + OUTp * 4 * n_m
                + Bp * OUTp * out_isz
            ),
        )

        out = pl.pallas_call(
            fc_block_kernel,
            out_shape=jax.ShapeDtypeStruct((Bp, OUTp), self.out_dtype),
            grid_spec=pltpu.PrefetchScalarGridSpec(
                num_scalar_prefetch=0,
                grid=grid,
                in_specs=[
                    pl.BlockSpec((tm, tk), lambda i, j, k: (i, k)),   # x tile
                    _w_block_spec(tk, tn, n_k),                       # W tile (Buffered(3))
                    pl.BlockSpec((1, tn), lambda i, j, k: (0, j)),    # bias tile
                ],
                out_specs=pl.BlockSpec((tm, tn), lambda i, j, k: (i, j)),
                scratch_shapes=[pltpu.VMEM((tm, tn), jnp.float32)],
            ),
            compiler_params=pltpu.CompilerParams(
                dimension_semantics=("parallel", "parallel", "arbitrary"),
                vmem_limit_bytes=vmem_limit,
            ),
            cost_estimate=cost,
        )(xp, self.w_padded, self.b_padded)

        out = out[:B, : self.out_features]
        return out.reshape(*orig_shape[:-1], self.out_features)


def init_fc_params(key, in_features, out_features):
    """Deterministic init matching nn.Linear's default (kaiming-uniform-ish)."""
    k_w, k_b = jax.random.split(key)
    bound = 1.0 / math.sqrt(in_features)
    # PyTorch stores weight as [out, in]; we store W^T as [in, out].
    w_t = jax.random.uniform(
        k_w, (in_features, out_features), jnp.float32, -bound, bound
    )
    b = jax.random.uniform(k_b, (out_features,), jnp.float32, -bound, bound)
    return w_t, b


if __name__ == "__main__":
    key = jax.random.PRNGKey(0)
    k_x, k_p, k_x2, k_p2 = jax.random.split(key, 4)

    # ---- Test 1: the module's toy shapes, f32 end-to-end (tight tolerance) ----
    in_features, out_features, batch = 32, 64, 8
    x = jax.random.normal(k_x, (batch, in_features), jnp.float32)
    w_t, b = init_fc_params(k_p, in_features, out_features)

    block = PallasFcBlock(w_t, b)  # weights cast/padded once, f32 compute
    out = jax.block_until_ready(block(x))
    ref = jnp.maximum(x @ w_t + b, 0.0)
    assert out.shape == (batch, out_features)
    assert jnp.allclose(out, ref, atol=1e-5, rtol=1e-5)

    # ---- Test 2: larger shapes exercising the tiled grid + bf16 MXU feed ----
    B2, IN2, OUT2 = 128, 1024, 1024
    x2 = jax.random.normal(k_x2, (B2, IN2), jnp.float32)
    w2, b2 = init_fc_params(k_p2, IN2, OUT2)

    block2 = PallasFcBlock(w2, b2, compute_dtype=jnp.bfloat16)
    out2 = jax.block_until_ready(block2(x2))
    ref2 = jnp.maximum(
        x2.astype(jnp.bfloat16).astype(jnp.float32)
        @ w2.astype(jnp.bfloat16).astype(jnp.float32)
        + b2,
        0.0,
    )
    assert out2.shape == (B2, OUT2)
    assert jnp.allclose(out2, ref2, atol=5e-2, rtol=5e-2)

    # TODO(synk): optional fp8 compute path for v7x (pre-quantized weights) not wired up.
    print("KERNEL_OK")
</pallas_src>

<mosaic_0001>
module attributes {stable_mosaic.version = 11 : i64} {
  func.func @fc_block_kernel(%arg0: i32, %arg1: i32, %arg2: i32, %arg3: memref<8x128xf32, #tpu.memory_space<vmem>>, %arg4: memref<128x128xf32, #tpu.memory_space<vmem>>, %arg5: memref<1x128xf32, #tpu.memory_space<vmem>>, %arg6: memref<8x128xf32, #tpu.memory_space<vmem>>, %arg7: memref<8x128xf32, #tpu.memory_space<vmem>>) attributes {dimension_semantics = [#tpu.dimension_semantics<parallel>, #tpu.dimension_semantics<parallel>, #tpu.dimension_semantics<arbitrary>], iteration_bounds = array<i64: 1, 1, 1>, scalar_prefetch = 0 : i64, scratch_operands = 1 : i64, tpu.core_type = #tpu.core_type<tc>, window_params = [{transform_indices = @transform_0, window_bounds = array<i64: 8, 128>}, {transform_indices = @transform_1, window_bounds = array<i64: 128, 128>}, {transform_indices = @transform_2, window_bounds = array<i64: 1, 128>}, {transform_indices = @transform_3, window_bounds = array<i64: 8, 128>}]} {
    %c0_i32 = arith.constant 0 : i32
    %0 = arith.cmpi eq, %arg2, %c0_i32 : i32
    %1 = arith.extui %0 : i1 to i32
    %c0_i32_0 = arith.constant 0 : i32
    %2 = arith.cmpi ne, %1, %c0_i32_0 : i32
    scf.if %2 {
      %c0_10 = arith.constant 0 : index
      %c0_11 = arith.constant 0 : index
      %12 = vector.load %arg5[%c0_10, %c0_11] : memref<1x128xf32, #tpu.memory_space<vmem>>, vector<1x128xf32>
      %13 = vector.shape_cast %12 : vector<1x128xf32> to vector<1x128xf32>
      %14 = vector.broadcast %13 : vector<1x128xf32> to vector<8x128xf32>
      %c0_12 = arith.constant 0 : index
      %c0_13 = arith.constant 0 : index
      %15 = vector.load %arg7[%c0_12, %c0_13] : memref<8x128xf32, #tpu.memory_space<vmem>>, vector<8x128xf32>
      tpu.vector_store %arg7[%c0_12, %c0_13], %14 {strides = array<i32>} : memref<8x128xf32, #tpu.memory_space<vmem>>, vector<8x128xf32>,
    } else {
    }
    %c0 = arith.constant 0 : index
    %c0_1 = arith.constant 0 : index
    %3 = vector.load %arg7[%c0, %c0_1] : memref<8x128xf32, #tpu.memory_space<vmem>>, vector<8x128xf32>
    %c0_2 = arith.constant 0 : index
    %c0_3 = arith.constant 0 : index
    %4 = vector.load %arg3[%c0_2, %c0_3] : memref<8x128xf32, #tpu.memory_space<vmem>>, vector<8x128xf32>
    %c0_4 = arith.constant 0 : index
    %c0_5 = arith.constant 0 : index
    %5 = vector.load %arg4[%c0_4, %c0_5] : memref<128x128xf32, #tpu.memory_space<vmem>>, vector<128x128xf32>
    %cst = arith.constant dense<0.000000e+00> : vector<8x128xf32>
    %6 = tpu.matmul %4, %5, %cst {dimension_numbers = #tpu.dot_dimension_numbers<[1], [0], [0], [1], [0, 0, 1, 1], [], []>} : vector<8x128xf32>, vector<128x128xf32>, vector<8x128xf32> -> vector<8x128xf32>
    %7 = arith.addf %3, %6 : vector<8x128xf32>
    %c0_6 = arith.constant 0 : index
    %c0_7 = arith.constant 0 : index
    %8 = vector.load %arg7[%c0_6, %c0_7] : memref<8x128xf32, #tpu.memory_space<vmem>>, vector<8x128xf32>
    tpu.vector_store %arg7[%c0_6, %c0_7], %7 {strides = array<i32>} : memref<8x128xf32, #tpu.memory_space<vmem>>, vector<8x128xf32>,
    %c0_i32_8 = arith.constant 0 : i32
    %9 = arith.cmpi eq, %arg2, %c0_i32_8 : i32
    %10 = arith.extui %9 : i1 to i32
    %c0_i32_9 = arith.constant 0 : i32
    %11 = arith.cmpi ne, %10, %c0_i32_9 : i32
    scf.if %11 {
      %c0_10 = arith.constant 0 : index
      %c0_11 = arith.constant 0 : index
      %12 = vector.load %arg7[%c0_10, %c0_11] : memref<8x128xf32, #tpu.memory_space<vmem>>, vector<8x128xf32>
      %cst_12 = arith.constant 0.000000e+00 : f32
      %13 = vector.broadcast %cst_12 : f32 to vector<8x128xf32>
      %14 = arith.maximumf %12, %13 : vector<8x128xf32>
      %c0_13 = arith.constant 0 : index
      %c0_14 = arith.constant 0 : index
      %15 = vector.load %arg6[%c0_13, %c0_14] : memref<8x128xf32, #tpu.memory_space<vmem>>, vector<8x128xf32>
      tpu.vector_store %arg6[%c0_13, %c0_14], %14 {strides = array<i32>} : memref<8x128xf32, #tpu.memory_space<vmem>>, vector<8x128xf32>,
    } else {
    }
    return
  }
  func.func @transform_0(%arg0: i32, %arg1: i32, %arg2: i32) -> (i32, i32) {
    %c0_i32 = arith.constant 0 : i32
    return %arg0, %arg2 : i32, i32
  }
  func.func @transform_1(%arg0: i32, %arg1: i32, %arg2: i32) -> (i32, i32) {
    %c0_i32 = arith.constant 0 : i32
    return %arg2, %arg1 : i32, i32
  }
  func.func @transform_2(%arg0: i32, %arg1: i32, %arg2: i32) -> (i32, i32) {
    %c0_i32 = arith.constant 0 : i32
    %c0_i32_0 = arith.constant 0 : i32
    return %c0_i32, %arg1 : i32, i32
  }
  func.func @transform_3(%arg0: i32, %arg1: i32, %arg2: i32) -> (i32, i32) {
    %c0_i32 = arith.constant 0 : i32
    return %arg0, %arg1 : i32, i32
  }
}

</mosaic_0001>

<bundles_post_ra>
// kernel: tpu_custom_call.1
= control target key start
LH: loop header
LB: loop body
LE: loop exit
PB: predicated region body
PF: predicated region fallthrough
CT: control target
= control target key end

     0   :  { %8 = vsyncpa [#allocation4], 0  ;;  %s396_s0 = inlined_call_operand.hbm [shape: f32[8,128], index: 0, kind: input, shape index: {}]   ;;  %s397_s1 = inlined_call_operand.hbm [shape: f32[128,128], index: 1, kind: input, shape index: {}]   ;;  %s398_s2 = inlined_call_operand.vmem [shape: f32[1,128], index: 2, kind: input, shape index: {}]   ;;  %s399_s3 = inlined_call_operand.hbm [shape: f32[8,128], index: 3, kind: output, shape index: {}]  }
   0x1   :  { %9 = vsyncpa [#allocation7], 0 }
   0x2   :  { %10 = vsyncpa [#allocation5], 0  ;;  %s322_s12 = smov [#allocation3]   ;;  %s323_s14 = smov [#allocation6]  }
   0x3   :  { %s17_s13 = sshll.u32 %s322_s12, 4  ;;  %s26_s15 = sshll.u32 %s323_s14, 4  ;;  %s18_s13 = int_to_ptr.vmem [resolvable:$true] %s17_s13  ;;  %s350_s15 = int_to_ptr.vmem [resolvable:$true] %s26_s15 }
   0x4   :  { %s250_s18 = scalar_lea.hbm %s396_s0, 128 }
   0x5   :  { %p251_p0 = scmp.ne.s32.totalorder %s396_s0, %s250_s18  ;;  %p254_p1 = scmp.lt.u32.totalorder %s250_s18, %s396_s0 }
   0x7   :  { %p256_p2 = pnand %p254_p1, %p251_p0 }
   0x9   :  { %259 = shalt.err (!%p256_p2)
}
   0xa   :  { %s260_s23 = scalar_lea.vmem %s18_s13, 128  ;;  %p265_p4 = scmp.lt.s32.totalorder %s18_s13, %s18_s13 }
   0xb   :  { %p261_p3 = scmp.ne.s32.totalorder %s18_s13, %s260_s23  ;;  %p266_p5 = scmp.lt.s32.totalorder %s260_s23, %s260_s23 }
   0xd   :  { %p267_p6 = por %p266_p5, %p265_p4 }
   0xf   :  { %p268_p7 = pnand %p267_p6, %p261_p3 }
  0x11   :  { %271 = shalt.err (!%p268_p7)
}
  0x12   :  { %20 = dma.hbm_to_vmem [thread:$0]  %s396_s0, 128, %s18_s13, [#allocation4]  }
  0x13   :  { %s272_s28 = scalar_lea.hbm %s397_s1, 2048 }
  0x14   :  { %p273_p8 = scmp.ne.s32.totalorder %s397_s1, %s272_s28  ;;  %p276_p9 = scmp.lt.u32.totalorder %s272_s28, %s397_s1 }
  0x16   :  { %p278_p10 = pnand %p276_p9, %p273_p8 }
  0x18   :  { %281 = shalt.err (!%p278_p10)
}
  0x19   :  { %s282_s6 = scalar_lea.vmem %s350_s15, 2048  ;;  %p287_p12 = scmp.lt.s32.totalorder %s350_s15, %s350_s15 }
  0x1a   :  { %p283_p11 = scmp.ne.s32.totalorder %s350_s15, %s282_s6  ;;  %p288_p13 = scmp.lt.s32.totalorder %s282_s6, %s282_s6 }
  0x1c   :  { %p289_p0 = por %p288_p13, %p287_p12 }
  0x1e   :  { %p290_p1 = pnand %p289_p0, %p283_p11 }
  0x20   :  { %293 = shalt.err (!%p290_p1)
}
  0x21   :  { %s324_s0 = smov 128   ;;  %s325_s7 = smov 8  }
  0x22   :  { %32 = dma.hbm_to_vmem [thread:$0]  %s397_s1, 2048, %s350_s15, [#allocation7], %s324_s0, %s324_s0, %s325_s7  }
  0x23   :  { %316 = dma.done.wait [#allocation4], 128  }
  0x24   :  { %317 = vsyncadd [#allocation4], 4294967168 }
  0x25   :  { %318 = dma.done.wait [#allocation7], 2048  }
  0x26   :  { %319 = vsyncadd [#allocation7], 4294965248  ;;  %v326_v0 = vmov 0.0|0.0   ;;  %vm327_vm0 = vmmov 0   ;;  %v328_v1 = vmov 0.0   ;;  %v55_v2 = vld [vmem:[#allocation6] sm:$0xff] }
  0x27   :  { %218 = vmatprep.subr.bf16.mxu0 %v326_v0  ;;  %215 = vmatprep.mubr.msk.f32.mxu0 %vm327_vm0, %v328_v1  ;;  %v56_v3 = vld [vmem:[#allocation6 + $0x8] sm:$0xff]  ;;  %v57_v4 = vld [vmem:[#allocation6 + $0x10] sm:$0xff]  ;;  %v58_v6 = vld [vmem:[#allocation6 + $0x18] sm:$0xff]  ;;  %s329_s11 = smov [#allocation8]  }
  0x28   :  { %v219_v5 = vpack.c.bf16 %v56_v3, %v55_v2  ;;  %v222_v7 = vpack.c.bf16 %v58_v6, %v57_v4  ;;  %v59_v8 = vld [vmem:[#allocation6 + $0x20] sm:$0xff]  ;;  %v60_v9 = vld [vmem:[#allocation6 + $0x28] sm:$0xff]  ;;  %v61_v11 = vld [vmem:[#allocation6 + $0x30] sm:$0xff]  ;;  %s155_s12 = sshll.u32 %s329_s11, 4  ;;  %s156_s12 = int_to_ptr.vmem [resolvable:$true] %s155_s12 }
  0x29   :  { %v225_v10 = vpack.c.bf16 %v60_v9, %v59_v8  ;;  %v62_v12 = vld [vmem:[#allocation6 + $0x38] sm:$0xff]  ;;  %v63_v14 = vld [vmem:[#allocation6 + $0x40] sm:$0xff]  ;;  %v64_v15 = vld [vmem:[#allocation6 + $0x48] sm:$0xff]  ;;  %s294_s13 = scalar_lea.vmem %s156_s12, 128  ;;  %p299_p3 = scmp.lt.s32.totalorder %s156_s12, %s156_s12 }
  0x2a   :  { %220 = vmatpush3.bf16.msra.mxu0 %v219_v5  ;;  %v228_v13 = vpack.c.bf16 %v62_v12, %v61_v11  ;;  %v231_v16 = vpack.c.bf16 %v64_v15, %v63_v14  ;;  %v65_v17 = vld [vmem:[#allocation6 + $0x50] sm:$0xff]  ;;  %v66_v18 = vld [vmem:[#allocation6 + $0x58] sm:$0xff]  ;;  %v67_v20 = vld [vmem:[#allocation6 + $0x60] sm:$0xff]  ;;  %p295_p2 = scmp.ne.s32.totalorder %s156_s12, %s294_s13  ;;  %p300_p4 = scmp.lt.s32.totalorder %s294_s13, %s294_s13 }
  0x2b   :  { %221 = vmatprep.subr.bf16.mxu0 %v326_v0  ;;  %v234_v19 = vpack.c.bf16 %v66_v18, %v65_v17  ;;  %v68_v21 = vld [vmem:[#allocation6 + $0x68] sm:$0xff]  ;;  %v69_v23 = vld [vmem:[#allocation6 + $0x70] sm:$0xff]  ;;  %v70_v24 = vld [vmem:[#allocation6 + $0x78] sm:$0xff] }
  0x2c   :  { %v237_v22 = vpack.c.bf16 %v68_v21, %v67_v20  ;;  %v240_v25 = vpack.c.bf16 %v70_v24, %v69_v23  ;;  %v54_v26 = vld [vmem:[#allocation3] sm:$0xff]  ;;  %p301_p5 = por %p300_p4, %p299_p3 }
  0x2d   :  { %v165_v27 = vld [vmem:[%s398_s2] ss:$0 sm:$0xff] }
  0x2e   :  { %223 = vmatpush3.bf16.msra.mxu0 %v222_v7  ;;  %p302_p6 = pnand %p301_p5, %p295_p2 }
  0x2f   :  { %224 = vmatprep.subr.bf16.mxu0 %v326_v0 }
  0x32   :  { %226 = vmatpush3.bf16.msra.mxu0 %v225_v10 }
  0x33   :  { %227 = vmatprep.subr.bf16.mxu0 %v326_v0 }
  0x36   :  { %229 = vmatpush3.bf16.msra.mxu0 %v228_v13 }
  0x37   :  { %230 = vmatprep.subr.bf16.mxu0 %v326_v0 }
  0x3a   :  { %232 = vmatpush3.bf16.msra.mxu0 %v231_v16 }
  0x3b   :  { %233 = vmatprep.subr.bf16.mxu0 %v326_v0 }
  0x3e   :  { %235 = vmatpush3.bf16.msra.mxu0 %v234_v19 }
  0x3f   :  { %236 = vmatprep.subr.bf16.mxu0 %v326_v0 }
  0x42   :  { %238 = vmatpush3.bf16.msra.mxu0 %v237_v22 }
  0x43   :  { %239 = vmatprep.subr.bf16.mxu0 %v326_v0 }
  0x46   :  { %241 = vmatpush3.bf16.msra.mxu0 %v240_v25 }
  0x49   :  { %216 = vmatmul.mubr.f32.vlgmr.msra.gmra.mrb[0].mxu0 %v54_v26 }
 0x11c   :  { %v137_v28 = vpop.f32.mrb[0].mxu0 }
 0x11d   :  { %v141_v29 = vadd.f32 %v165_v27, %v137_v28  ;;  %v217_v30 = vpop.f32.mrb[1].mxu0 }
 0x11f   :  { %v147_v31 = vmax.f32 %v141_v29, 0.0 }
 0x121   :  { %148 = vst [vmem:[#allocation8] sm:$0xff] %v147_v31 }
 0x122   :  { %305 = shalt.err (!%p302_p6)
}
 0x123   :  { %s306_s16 = scalar_lea.hbm %s399_s3, 128 }
 0x124   :  { %p307_p7 = scmp.ne.s32.totalorder %s399_s3, %s306_s16  ;;  %p310_p8 = scmp.lt.u32.totalorder %s306_s16, %s399_s3 }
 0x126   :  { %p312_p9 = pnand %p310_p8, %p307_p7 }
 0x128   :  { %315 = shalt.err (!%p312_p9)
}
 0x129   :  { %158 = dma.vmem_to_hbm [thread:$0]  %s156_s12, 128, %s399_s3, [#allocation5]  }
 0x12a   :  { %320 = dma.done.wait [#allocation5], 128  }
 0x12b   :  { %321 = vsyncadd [#allocation5], 4294967168 }
 0x12c   :  { %162 = vsyncpa [#allocation4], 1 }
 0x12d   :  { %163 = vsyncpa [#allocation7], 1 }
 0x12e   :  { %164 = vsyncpa [#allocation5], 1 }

</bundles_post_ra>
